<compile_context>
chip_gen: v7x
topology: tpu7x:2x2x1
jax: 0.10.0
libtpu: 0.0.40
codegen_flags: <defaults>
</compile_context>

<pallas_src>
import jax
import jax.numpy as jnp
from jax.experimental import pallas as pl
from jax.experimental.pallas import tpu as pltpu


def _palayer_kernel(x_ref, w1_ref, b1_ref, w2_ref, b2_ref, o_ref):
    # x_ref : (1, C, TP)   tile: channels on sublanes, pixels on lanes
    # w1_ref: (Cr, C)      conv1 weight (1x1, squeezed), Cr = C // 8
    # b1_ref: (Cr, 1)      conv1 bias
    # w2_ref: (Cr, 1)      conv2 weight (1x1, squeezed, transposed)
    # b2_ref: (1, 1)       conv2 bias (SMEM scalar)
    # o_ref : (1, C, TP)
    x = x_ref[0]                                              # (C, TP)

    # Conv1 (1x1) + ReLU: (Cr, C) @ (C, TP) -> (Cr, TP), lane-dense output.
    h = jnp.dot(w1_ref[...], x, preferred_element_type=jnp.float32)
    h = jnp.maximum(h + b1_ref[...], 0.0)                     # (Cr, TP)

    # Conv2 (1x1) -> single attention logit per pixel.
    # VPU multiply + sublane reduce (avoids a 1-output-row MXU pass).
    logit = jnp.sum(h * w2_ref[...], axis=0, keepdims=True) + b2_ref[0, 0]
    y = jax.nn.sigmoid(logit)                                 # (1, TP)

    # Pixel attention: broadcast over channels (sublane broadcast).
    o_ref[0] = (x * y).astype(o_ref.dtype)


def palayer_forward(x_nchw, w1, b1, w2, b2, *, target_block_bytes=2 << 20):
    """x_nchw: (N, C, H, W) float32.
    w1: (Cr, C) conv1 weight (squeezed 1x1), b1: (Cr,)
    w2: (1, Cr) conv2 weight (squeezed 1x1), b2: (1,)
    Returns: (N, C, H, W)
    """
    N, C, H, W = x_nchw.shape
    Cr = w1.shape[0]
    HW = H * W

    # NCHW -> (N, C, HW): pure reshape, no transpose / extra HBM pass.
    x3 = x_nchw.reshape(N, C, HW)

    # Pick a lane-dense pixel tile (~target_block_bytes per input block).
    itemsize = jnp.dtype(x_nchw.dtype).itemsize
    tile = max(128, (target_block_bytes // (C * itemsize)) // 128 * 128)
    tile = min(tile, pl.cdiv(HW, 128) * 128)
    # Keep >=2 total grid steps when possible (feeds both v7x TensorCores).
    if N * pl.cdiv(HW, tile) < 2 and tile > 128:
        tile = max(128, (tile // 2) // 128 * 128)

    hw_pad = pl.cdiv(HW, tile) * tile
    if hw_pad != HW:
        x3 = jnp.pad(x3, ((0, 0), (0, 0), (0, hw_pad - HW)))

    w1_r = w1.reshape(Cr, C)
    b1_r = b1.reshape(Cr, 1)
    w2_r = w2.reshape(Cr, 1)      # (1, Cr) row -> (Cr, 1) column
    b2_r = b2.reshape(1, 1)

    grid = (N, hw_pad // tile)
    out3 = pl.pallas_call(
        _palayer_kernel,
        out_shape=jax.ShapeDtypeStruct((N, C, hw_pad), x3.dtype),
        grid_spec=pltpu.PrefetchScalarGridSpec(
            num_scalar_prefetch=0,
            grid=grid,
            in_specs=[
                pl.BlockSpec((1, C, tile), lambda n, j: (n, 0, j)),
                pl.BlockSpec((Cr, C), lambda n, j: (0, 0)),
                pl.BlockSpec((Cr, 1), lambda n, j: (0, 0)),
                pl.BlockSpec((Cr, 1), lambda n, j: (0, 0)),
                pl.BlockSpec(memory_space=pltpu.MemorySpace.SMEM),
            ],
            out_specs=pl.BlockSpec((1, C, tile), lambda n, j: (n, 0, j)),
        ),
        compiler_params=pltpu.CompilerParams(
            dimension_semantics=("parallel", "parallel")),
    )(x3, w1_r, b1_r, w2_r, b2_r)

    # Drop pixel padding and restore NCHW (reshape only, no transpose).
    return out3[:, :, :HW].reshape(N, C, H, W)


if __name__ == "__main__":
    key = jax.random.PRNGKey(0)
    k_x, k_w1, k_b1, k_w2, k_b2 = jax.random.split(key, 5)

    # Small shapes consistent with the module: channel must be divisible by 8.
    N, C, H, W = 2, 64, 16, 16
    Cr = C // 8

    x = jax.random.normal(k_x, (N, C, H, W), dtype=jnp.float32)

    # Deterministic synthetic parameters (Conv2d 1x1 weights squeezed).
    w1 = jax.random.normal(k_w1, (Cr, C), dtype=jnp.float32) * 0.1   # conv1.weight[:, :, 0, 0]
    b1 = jax.random.normal(k_b1, (Cr,), dtype=jnp.float32) * 0.1     # conv1.bias
    w2 = jax.random.normal(k_w2, (1, Cr), dtype=jnp.float32) * 0.1   # conv2.weight[:, :, 0, 0]
    b2 = jax.random.normal(k_b2, (1,), dtype=jnp.float32) * 0.1      # conv2.bias

    out = palayer_forward(x, w1, b1, w2, b2)
    out = jax.block_until_ready(out)

    # Pure-JAX reference check of the same math.
    h_ref = jnp.maximum(jnp.einsum("nchw,rc->nrhw", x, w1)
                        + b1[None, :, None, None], 0.0)
    y_ref = jax.nn.sigmoid(jnp.einsum("nrhw,or->nohw", h_ref, w2)
                           + b2[None, :, None, None])
    ref = x * y_ref
    assert out.shape == (N, C, H, W)
    assert jnp.allclose(out, ref, atol=1e-5, rtol=1e-5)

    print("KERNEL_OK")
</pallas_src>

<mosaic_0001>
module attributes {stable_mosaic.version = 11 : i64} {
  func.func @_palayer_kernel(%arg0: i32, %arg1: i32, %arg2: memref<1x64x256xf32, #tpu.memory_space<vmem>>, %arg3: memref<8x64xf32, #tpu.memory_space<vmem>>, %arg4: memref<8x1xf32, #tpu.memory_space<vmem>>, %arg5: memref<8x1xf32, #tpu.memory_space<vmem>>, %arg6: memref<1x1xf32, #tpu.memory_space<smem>>, %arg7: memref<1x64x256xf32, #tpu.memory_space<vmem>>) attributes {dimension_semantics = [#tpu.dimension_semantics<parallel>, #tpu.dimension_semantics<parallel>], iteration_bounds = array<i64: 2, 1>, scalar_prefetch = 0 : i64, scratch_operands = 0 : i64, tpu.core_type = #tpu.core_type<tc>, window_params = [{transform_indices = @transform_0, window_bounds = array<i64: 1, 64, 256>}, {pipeline_mode = #tpu.pipeline_mode<synchronous>, transform_indices = @transform_1, window_bounds = array<i64: 8, 64>}, {pipeline_mode = #tpu.pipeline_mode<synchronous>, transform_indices = @transform_2, window_bounds = array<i64: 8, 1>}, {pipeline_mode = #tpu.pipeline_mode<synchronous>, transform_indices = @transform_3, window_bounds = array<i64: 8, 1>}, {transform_indices = @transform_4, window_bounds = array<i64: 1, 1>}, {transform_indices = @transform_5, window_bounds = array<i64: 1, 64, 256>}]} {
    %c0 = arith.constant 0 : index
    %c0_0 = arith.constant 0 : index
    %c0_1 = arith.constant 0 : index
    %0 = vector.load %arg2[%c0, %c0_0, %c0_1] : memref<1x64x256xf32, #tpu.memory_space<vmem>>, vector<1x64x256xf32>
    %1 = vector.shape_cast %0 : vector<1x64x256xf32> to vector<64x256xf32>
    %c0_2 = arith.constant 0 : index
    %c0_3 = arith.constant 0 : index
    %2 = vector.load %arg3[%c0_2, %c0_3] : memref<8x64xf32, #tpu.memory_space<vmem>>, vector<8x64xf32>
    %cst = arith.constant dense<0.000000e+00> : vector<8x256xf32>
    %3 = tpu.matmul %2, %1, %cst {dimension_numbers = #tpu.dot_dimension_numbers<[1], [0], [0], [1], [0, 0, 1, 1], [], []>} : vector<8x64xf32>, vector<64x256xf32>, vector<8x256xf32> -> vector<8x256xf32>
    %c0_4 = arith.constant 0 : index
    %c0_5 = arith.constant 0 : index
    %4 = vector.load %arg4[%c0_4, %c0_5] : memref<8x1xf32, #tpu.memory_space<vmem>>, vector<8x1xf32>
    %5 = vector.broadcast %4 : vector<8x1xf32> to vector<8x256xf32>
    %6 = arith.addf %3, %5 : vector<8x256xf32>
    %cst_6 = arith.constant 0.000000e+00 : f32
    %7 = vector.broadcast %cst_6 : f32 to vector<8x256xf32>
    %8 = arith.maximumf %6, %7 : vector<8x256xf32>
    %c0_7 = arith.constant 0 : index
    %c0_8 = arith.constant 0 : index
    %9 = vector.load %arg5[%c0_7, %c0_8] : memref<8x1xf32, #tpu.memory_space<vmem>>, vector<8x1xf32>
    %10 = vector.broadcast %9 : vector<8x1xf32> to vector<8x256xf32>
    %11 = arith.mulf %8, %10 : vector<8x256xf32>
    %cst_9 = arith.constant dense<0.000000e+00> : vector<256xf32>
    %12 = vector.multi_reduction <add>, %11, %cst_9 [0] : vector<8x256xf32> to vector<256xf32>
    %13 = vector.shape_cast %12 : vector<256xf32> to vector<1x256xf32>
    %c0_10 = arith.constant 0 : index
    %c0_11 = arith.constant 0 : index
    %14 = memref.load %arg6[%c0_10, %c0_11] : memref<1x1xf32, #tpu.memory_space<smem>>
    %15 = vector.broadcast %14 : f32 to vector<1x256xf32>
    %16 = arith.addf %13, %15 : vector<1x256xf32>
    %17 = arith.negf %16 : vector<1x256xf32>
    %18 = math.exp %17 : vector<1x256xf32>
    %cst_12 = arith.constant 1.000000e+00 : f32
    %19 = vector.broadcast %cst_12 : f32 to vector<1x256xf32>
    %20 = arith.addf %19, %18 : vector<1x256xf32>
    %21 = arith.divf %19, %20 : vector<1x256xf32>
    %22 = vector.broadcast %21 : vector<1x256xf32> to vector<64x256xf32>
    %23 = arith.mulf %1, %22 : vector<64x256xf32>
    %c0_13 = arith.constant 0 : index
    %c0_14 = arith.constant 0 : index
    %c0_15 = arith.constant 0 : index
    %24 = vector.load %arg7[%c0_13, %c0_14, %c0_15] : memref<1x64x256xf32, #tpu.memory_space<vmem>>, vector<1x64x256xf32>
    %25 = vector.shape_cast %24 : vector<1x64x256xf32> to vector<64x256xf32>
    %26 = vector.shape_cast %23 : vector<64x256xf32> to vector<1x64x256xf32>
    tpu.vector_store %arg7[%c0_13, %c0_14, %c0_15], %26 {strides = array<i32>} : memref<1x64x256xf32, #tpu.memory_space<vmem>>, vector<1x64x256xf32>,
    return
  }
  func.func @transform_0(%arg0: i32, %arg1: i32) -> (i32, i32, i32) {
    %c0_i32 = arith.constant 0 : i32
    %c0_i32_0 = arith.constant 0 : i32
    return %arg0, %c0_i32, %arg1 : i32, i32, i32
  }
  func.func @transform_1(%arg0: i32, %arg1: i32) -> (i32, i32) {
    %c0_i32 = arith.constant 0 : i32
    %c0_i32_0 = arith.constant 0 : i32
    %c0_i32_1 = arith.constant 0 : i32
    return %c0_i32, %c0_i32_0 : i32, i32
  }
  func.func @transform_2(%arg0: i32, %arg1: i32) -> (i32, i32) {
    %c0_i32 = arith.constant 0 : i32
    %c0_i32_0 = arith.constant 0 : i32
    %c0_i32_1 = arith.constant 0 : i32
    return %c0_i32, %c0_i32_0 : i32, i32
  }
  func.func @transform_3(%arg0: i32, %arg1: i32) -> (i32, i32) {
    %c0_i32 = arith.constant 0 : i32
    %c0_i32_0 = arith.constant 0 : i32
    %c0_i32_1 = arith.constant 0 : i32
    return %c0_i32, %c0_i32_0 : i32, i32
  }
  func.func @transform_4(%arg0: i32, %arg1: i32) -> (i32, i32) {
    %c0_i32 = arith.constant 0 : i32
    %c0_i32_0 = arith.constant 0 : i32
    %c0_i32_1 = arith.constant 0 : i32
    return %c0_i32, %c0_i32_0 : i32, i32
  }
  func.func @transform_5(%arg0: i32, %arg1: i32) -> (i32, i32, i32) {
    %c0_i32 = arith.constant 0 : i32
    %c0_i32_0 = arith.constant 0 : i32
    return %arg0, %c0_i32, %arg1 : i32, i32, i32
  }
}

</mosaic_0001>

<bundles_post_ra>
// kernel: tpu_custom_call.1
= control target key start
LH: loop header
LB: loop body
LE: loop exit
PB: predicated region body
PF: predicated region fallthrough
CT: control target
= control target key end

     0   :  { %s1092_s0 = inlined_call_operand.hbm [shape: f32[2,64,256], index: 0, kind: input, shape index: {}]   ;;  %s1093_s1 = inlined_call_operand.vmem [shape: f32[8,64], index: 1, kind: input, shape index: {}]   ;;  %s1094_s2 = inlined_call_operand.vmem [shape: f32[8,1], index: 2, kind: input, shape index: {}]   ;;  %s1095_s3 = inlined_call_operand.vmem [shape: f32[8,1], index: 3, kind: input, shape index: {}]   ;;  %s1096_s4 = inlined_call_operand.<no memory space> [shape: f32[1,1], index: 4, kind: input, shape index: {}]   ;;  %s1097_s5 = inlined_call_operand.hbm [shape: f32[2,64,256], index: 5, kind: output, shape index: {}]  }
   0x1   :  { %10 = sst [smem:[#allocation2]] %s1096_s4 }
   0x2   :  { %11 = vsyncpa [#allocation4], 0 }
   0x3   :  { %13 = vsyncpa [#allocation4 + $0x1], 0 }
   0x4   :  { %14 = vsyncpa [#allocation5], 0 }
   0x5   :  { %16 = vsyncpa [#allocation5 + $0x1], 0  ;;  %s803_s20 = smov 0   ;;  %s805_s21 = smov 0  }
   0x6   :  { %s807_s22 = smov 0   ;;  %s809_s23 = smov 0  }
   0x7   :  { %s811_s24 = smov 0   ;;  %s813_s25 = smov 0  }
   0x8 LB: > { %s535_s4 = sadd.s32 4294967295, %s760_s25   ;;  %s536_s26 = sadd.s32 4294967294, %s760_s25   ;;  %s760_s25 = sphi %s813_s25, %s22_s25   ;;  %s756_s24 = sphi %s811_s24, %s1112_s24   ;;  %s752_s23 = sphi %s809_s23, %s1111_s23   ;;  %s748_s22 = sphi %s807_s22, %s1110_s22   ;;  %s744_s21 = sphi %s805_s21, %s1109_s21   ;;  %s740_s20 = sphi %s803_s20, %s1108_s20  }
   0x9   : > { %s34_s27 = sadd.s32 1, %s756_s24  ;;  %s43_s28 = sadd.s32 1, %s748_s22 }
   0xa   : > { %p36_p0 = scmp.ge.s32.totalorder %s34_s27, 2  ;;  %p50_p1 = scmp.ne.s32.totalorder %s748_s22, %s744_s21 }
   0xb   : > { %p51_p2 = scmp.eq.s32.totalorder %s760_s25, 0  ;;  %p56_p3 = scmp.ne.s32.totalorder %s744_s21, %s740_s20 }
   0xc   : > { %s1114_s27 = smov (%p36_p0, %s34_s27), 0  ;;  %p57_p5 = scmp.eq.s32.totalorder %s535_s4, 0 }
   0xd   : > { %p844_p4 = por %p51_p2, %p50_p1  ;;  %s38_s30 = ssub.s32 %s756_s24, %s1114_s27 }
   0xe   : > { %p166_p6 = scmp.eq.s32.totalorder %s535_s4, 1  ;;  %p41_p7 = scmp.eq.s32.totalorder %s38_s30, 0 }
   0xf   : > { %p850_p8 = por %p57_p5, %p56_p3  ;;  %p172_p10 = scmp.eq.s32.totalorder %s536_s26, 1 }
  0x10   : > { %p854_p9 = por %p166_p6, %p50_p1  ;;  %p583_p13 = scmp.lt.s32.totalorder %s760_s25, 2 }
  0x11   : > { %s859_s8 = scalar_select %p41_p7, %s748_s22, %s43_s28  }
  0x12   : > { %s1101_s7 = scalar_select %p854_p9, 1, 0 }
  0x13   : > { %p861_p11 = por %p172_p10, %p56_p3  ;;  %s204_s10 = sand.u32 1, %s748_s22  }
  0x14   : > { %s539_s11 = sshll.u32 %s204_s10, 7  ;;  %s553_s12 = sshll.u32 %s756_s24, 11 }
  0x15   : > { %s1102_s9 = scalar_select %p861_p11, 1, 0 }
  0x16   : > { %s872_s15 = scalar_lea.hbm %s1092_s0, %s553_s12  ;;  %s208_s16 = scalar_lea.vmem [#allocation3], %s539_s11 }
  0x17   : > { %s217_s17 = sshll.u32 %s208_s16, 4  ;;  %p878_p0 = pnand %p583_p13, %p844_p4  ;;  %s874_s17 = int_to_ptr.vmem [resolvable:$true] %s217_s17 }
  0x18   : > { %s883_s19 = scalar_lea.sflag [#allocation4], %s204_s10  ;;  %s648_s4 = scalar_lea.hbm %s872_s15, 2048 }
  0x19   : > { %p649_p2 = scmp.ne.s32.totalorder %s872_s15, %s648_s4  ;;  %p650_p3 = pneg %p878_p0 }
  0x1a   : > { %s653_s29 = scalar_lea.hbm %s1092_s0, 4096  ;;  %p654_p4 = scmp.lt.u32.totalorder %s872_s15, %s1092_s0 }
  0x1b   : > { %p651_p5 = pnand %p650_p3, %p649_p2  ;;  %p655_p7 = scmp.lt.u32.totalorder %s653_s29, %s648_s4 }
  0x1c   : > { %p657_p13 = scmp.lt.u32.totalorder %s648_s4, %s872_s15 }
  0x1d   : > { %p652_p6 = pneg %p651_p5  ;;  %p656_p10 = por %p655_p7, %p654_p4 }
  0x1f   : > { %p658_p12 = por %p657_p13, %p656_p10 }
  0x21   : > { %p659_p1 = pnand %p658_p12, %p652_p6 }
  0x23   : > { %662 = shalt.err (!%p659_p1)
}
  0x24   : > { %s663_s10 = scalar_lea.vmem %s874_s17, 2048  ;;  %s762_s12 = smov [#allocation3]  }
  0x25   : > { %p664_p2 = scmp.ne.s32.totalorder %s874_s17, %s663_s10  ;;  %s668_s13 = sshll.u32 %s762_s12, 4  ;;  %s669_s13 = int_to_ptr.vmem [resolvable:$false] %s668_s13 }
  0x26   : > { %s670_s14 = scalar_lea.vmem %s669_s13, 4096  ;;  %p671_p9 = scmp.lt.s32.totalorder %s874_s17, %s669_s13 }
  0x27   : > { %p666_p5 = pnand %p664_p2, %p650_p3  ;;  %p672_p4 = scmp.lt.s32.totalorder %s670_s14, %s663_s10 }
  0x29   : > { %p667_p11 = pneg %p666_p5  ;;  %p673_p7 = por %p672_p4, %p671_p9 }
  0x2b   : > { %p674_p10 = pnand %p673_p7, %p667_p11 }
  0x2d   : > { %677 = shalt.err (!%p674_p10)
}
  0x2e   : > { %s763_s16 = smov 256   ;;  %s764_s4 = smov 16  }
  0x2f   : > { %578 = dma.hbm_to_vmem [thread:$0]  (!%p878_p0), %s872_s15, 2048, %s874_s17, %s883_s19, %s763_s16, %s763_s16, %s764_s4  }
  0x30   : > { %p225_p12 = scmp.lt.s32.totalorder %s760_s25, 3  ;;  %p1104_p1 = scmp.ge.s32.totalorder %s760_s25, 1 }
  0x32   : > { %p226_p3 = pnand %p1104_p1, %p225_p12 }
  0x33   : > { %s915_s26 = sand.u32 (!%p226_p3), 1, %s744_s21  }
  0x34   : > { %229 = sbr.rel (%p226_p3) target bundleno = 362 (0x16a), region = 40  ;;  %s543_s28 = sshll.u32 (!%p226_p3), %s915_s26, 7 }
  0x35   : > { %s232_s29 = scalar_lea.sflag (!%p226_p3), [#allocation4], %s915_s26  ;;  %s921_s30 = scalar_lea.vmem (!%p226_p3), [#allocation3], %s543_s28 }
  0x3b   : > { %731 = dma.done.wait (%p850_p8), %s232_s29, 2048  }
  0x3c   : > { %733 = vsyncadd (%p850_p8), %s232_s29, 4294965248  ;;  %v765_v0 = vmov 0.0   ;;  %v766_v1 = vmov 0   ;;  %v928_v2 = vld [vmem:[%s921_s30 + $0x8] sm:$0xff]  ;;  %v931_v3 = vld [vmem:[%s921_s30 + $0x18] sm:$0xff]  ;;  %vm287_vm0 = vcmask 523264  }
  0x3d   : > { %355 = vmatprep.mubr.f32.mxu0 %v765_v0  ;;  %639 = vset.pattern.permute.xlu0 %v766_v1  ;;  %v934_v4 = vld [vmem:[%s921_s30] sm:$0xff]  ;;  %v555_v5 = vpack.c.bf16 %v931_v3, %v928_v2  ;;  %v939_v6 = vld [vmem:[%s921_s30 + $0x10] sm:$0xff]  ;;  %v942_v7 = vld [vmem:[%s921_s30 + $0x28] sm:$0xff]  ;;  %s384_s10 = sld [smem:[#allocation2]]  ;;  %s554_s12 = sshll.u32 %s752_s23, 11 }
  0x3e   : > { %v945_v8 = vld [vmem:[%s921_s30 + $0x38] sm:$0xff]  ;;  %v557_v9 = vpack.c.bf16 %v939_v6, %v934_v4  ;;  %v952_v11 = vld [vmem:[%s921_s30 + $0x20] sm:$0xff]  ;;  %v955_v12 = vld [vmem:[%s921_s30 + $0x30] sm:$0xff]  ;;  %s1003_s13 = scalar_lea.vmem [#allocation6], %s543_s28  ;;  %s1025_s4 = scalar_lea.hbm %s1097_s5, %s554_s12 }
  0x3f   : > { %v559_v10 = vpack.c.bf16 %v945_v8, %v942_v7  ;;  %v958_v13 = vld [vmem:[%s921_s30 + $0x48] sm:$0xff]  ;;  %556 = vmatprep.subr.bf16.mxu0 %v555_v5  ;;  %v961_v14 = vld [vmem:[%s921_s30 + $0x58] sm:$0xff]  ;;  %v561_v15 = vpack.c.bf16 %v955_v12, %v952_v11  ;;  %v968_v17 = vld [vmem:[%s921_s30 + $0x40] sm:$0xff]  ;;  %s448_s14 = sshll.u32 %s1003_s13, 4  ;;  %s433_s28 = scalar_lea.sflag [#allocation5], %s915_s26  ;;  %s1027_s14 = int_to_ptr.vmem [resolvable:$true] %s448_s14 }
  0x40   : > { %558 = vmatpush1.bf16.msra.mxu0 %v557_v9  ;;  %v563_v16 = vpack.c.bf16 %v961_v14, %v958_v13  ;;  %v971_v18 = vld [vmem:[%s921_s30 + $0x50] sm:$0xff]  ;;  %v281_v19 = vld [vmem:[%s1094_s2] sm:$0xff]  ;;  %v977_v20 = vld [vmem:[%s921_s30 + $0x68] sm:$0xff]  ;;  %s678_s29 = scalar_lea.vmem %s1027_s14, 2048  ;;  %p1105_p9 = scmp.ne.s32.totalorder %s1101_s7, 0 }
  0x41   : > { %560 = vmatprep.subr.bf16.mxu0 %v559_v10  ;;  %v980_v21 = vld [vmem:[%s921_s30 + $0x78] sm:$0xff]  ;;  %284 = vperm.xlu0 %639, %v281_v19   ;;  %v364_v22 = vld [vmem:[%s1095_s3] sm:$0xff]  ;;  %v565_v23 = vpack.c.bf16 %v971_v18, %v968_v17  ;;  %v993_v26 = vld [vmem:[%s921_s30 + $0x70] sm:$0xff]  ;;  %p679_p8 = scmp.ne.s32.totalorder %s1027_s14, %s678_s29 }
  0x42   : > { %v567_v24 = vpack.c.bf16 %v980_v21, %v977_v20  ;;  %v990_v25 = vld [vmem:[%s921_s30 + $0x60] sm:$0xff]  ;;  %s767_s30 = smov [#allocation6]  }
  0x43   : > { %v569_v27 = vpack.c.bf16 %v993_v26, %v990_v25  ;;  %v280_v28 = vld [vmem:[%s1093_s1] sm:$0xff]  ;;  %v385_v48 = vstv %s384_s10  ;;  %p680_p11 = pnand %p679_p8, %p1105_p9  ;;  %s682_s6 = sshll.u32 %s767_s30, 4  ;;  %s683_s6 = int_to_ptr.vmem [resolvable:$false] %s682_s6 }
  0x44   : > { %562 = vmatpush1.bf16.msra.mxu0 %v561_v15  ;;  %s684_s15 = scalar_lea.vmem %s683_s6, 4096  ;;  %p685_p6 = scmp.lt.s32.totalorder %s1027_s14, %s683_s6 }
  0x45   : > { %564 = vmatprep.subr.bf16.mxu0 %v563_v16  ;;  %367 = vperm.xlu0 %639, %v364_v22   ;;  %p681_p0 = pneg %p680_p11  ;;  %p686_p13 = scmp.lt.s32.totalorder %s684_s15, %s678_s29 }
  0x47   : > { %p687_p2 = por %p686_p13, %p685_p6 }
  0x48   : > { %566 = vmatpush1.bf16.msra.mxu0 %v565_v23 }
  0x49   : > { %568 = vmatprep.subr.bf16.mxu0 %v567_v24  ;;  %p688_p5 = pnand %p687_p2, %p681_p0 }
  0x4c   : > { %570 = vmatpush1.bf16.msra.mxu0 %v569_v27 }
  0x4f   : > { %545 = vmatmul.mubr.msk.f32.vlgmr.msra.gmra.mrb[0].mxu0 %vm287_vm0, %v280_v28 }
  0xc0   : > { %v285_v29 = vpop.permute.xlu0 %284 }
  0xc4   : > { %v368_v35 = vpop.permute.xlu0 %367 }
 0x122   : > { %v357_v30 = vpop.f32.mrb[0].mxu0 }
 0x123   : > { %v358_v31 = vadd.f32 %v357_v30, %v285_v29  ;;  %v359_v32 = vpop.f32.mrb[1].mxu0 }
 0x124   : > { %v360_v33 = vadd.f32 %v359_v32, %v285_v29 }
 0x125   : > { %v362_v34 = vmax.f32 %v358_v31, 0.0 }
 0x126   : > { %v363_v36 = vmax.f32 %v360_v33, 0.0 }
 0x127   : > { %v370_v37 = vmul.f32 %v368_v35, %v362_v34 }
 0x128   : > { %v371_v38 = vmul.f32 %v368_v35, %v363_v36 }
 0x129   : > { %v372_v39 = vrot.slane %v370_v37, 4 }
 0x12a   : > { %v378_v40 = vrot.slane %v371_v38, 4 }
 0x12b   : > { %v373_v41 = vadd.f32 %v372_v39, %v370_v37 }
 0x12c   : > { %v379_v42 = vadd.f32 %v378_v40, %v371_v38 }
 0x12d   : > { %v374_v43 = vrot.slane %v373_v41, 2 }
 0x12e   : > { %v380_v44 = vrot.slane %v379_v42, 2 }
 0x12f   : > { %v375_v45 = vadd.f32 %v374_v43, %v373_v41 }
 0x130   : > { %v381_v46 = vadd.f32 %v380_v44, %v379_v42 }
 0x131   : > { %v376_v47 = vrot.slane %v375_v45, 1 }
 0x132   : > { %v382_v49 = vrot.slane %v381_v46, 1 }
 0x133   : > { %v377_v50 = vadd.f32 %v376_v47, %v375_v45 }
 0x134   : > { %v383_v51 = vadd.f32 %v382_v49, %v381_v46 }
 0x135   : > { %v386_v52 = vadd.f32 %v385_v48, %v377_v50 }
 0x136   : > { %v387_v53 = vadd.f32 %v385_v48, %v383_v51 }
 0x137   : > { %v546_v54 = vmul.f32 -1.442695, %v386_v52 }
 0x138   : > { %v547_v55 = vmul.f32 -1.442695, %v387_v53 }
 0x139   : > { %640 = vpow2.f32 %v546_v54 }
 0x13a   : > { %642 = vpow2.f32 %v547_v55 }
 0x143   : > { %v641_v56 = vpop.eup %640 }
 0x144   : > { %v643_v57 = vpop.eup %642  ;;  %v394_v58 = vadd.f32 1.0, %v641_v56 }
 0x145   : > { %v395_v59 = vadd.f32 1.0, %v643_v57 }
 0x146   : > { %644 = vrcp.f32 %v394_v58 }
 0x147   : > { %646 = vrcp.f32 %v395_v59 }
 0x150   : > { %v645_v60 = vpop.eup %644 }
 0x151   : > { %v647_v61 = vpop.eup %646  ;;  %v400_v62 = vmul.f32 %v645_v60, %v934_v4  ;;  %v402_v63 = vmul.f32 %v645_v60, %v939_v6  ;;  %v404_v0 = vmul.f32 %v645_v60, %v952_v11  ;;  %v406_v1 = vmul.f32 %v645_v60, %v955_v12 }
 0x152   : > { %v401_v5 = vmul.f32 %v647_v61, %v928_v2  ;;  %v403_v9 = vmul.f32 %v647_v61, %v931_v3  ;;  %v405_v10 = vmul.f32 %v647_v61, %v942_v7  ;;  %v407_v15 = vmul.f32 %v647_v61, %v945_v8 }
 0x153   : > { %v408_v16 = vmul.f32 %v645_v60, %v968_v17  ;;  %v409_v4 = vmul.f32 %v647_v61, %v958_v13  ;;  %v410_v6 = vmul.f32 %v645_v60, %v971_v18  ;;  %v411_v11 = vmul.f32 %v647_v61, %v961_v14  ;;  %416 = vst [vmem:[%s1003_s13] sm:$0xff] %v400_v62 }
 0x154   : > { %418 = vst [vmem:[%s1003_s13 + $0x10] sm:$0xff] %v402_v63  ;;  %420 = vst [vmem:[%s1003_s13 + $0x20] sm:$0xff] %v404_v0  ;;  %v412_v2 = vmul.f32 %v645_v60, %v990_v25  ;;  %v413_v3 = vmul.f32 %v647_v61, %v977_v20  ;;  %v414_v7 = vmul.f32 %v645_v60, %v993_v26 }
 0x155   : > { %422 = vst [vmem:[%s1003_s13 + $0x30] sm:$0xff] %v406_v1  ;;  %v415_v8 = vmul.f32 %v647_v61, %v980_v21  ;;  %417 = vst [vmem:[%s1003_s13 + $0x8] sm:$0xff] %v401_v5 }
 0x156   : > { %419 = vst [vmem:[%s1003_s13 + $0x18] sm:$0xff] %v403_v9  ;;  %421 = vst [vmem:[%s1003_s13 + $0x28] sm:$0xff] %v405_v10 }
 0x157   : > { %423 = vst [vmem:[%s1003_s13 + $0x38] sm:$0xff] %v407_v15  ;;  %424 = vst [vmem:[%s1003_s13 + $0x40] sm:$0xff] %v408_v16 }
 0x158   : > { %425 = vst [vmem:[%s1003_s13 + $0x48] sm:$0xff] %v409_v4  ;;  %426 = vst [vmem:[%s1003_s13 + $0x50] sm:$0xff] %v410_v6 }
 0x159   : > { %427 = vst [vmem:[%s1003_s13 + $0x58] sm:$0xff] %v411_v11  ;;  %428 = vst [vmem:[%s1003_s13 + $0x60] sm:$0xff] %v412_v2 }
 0x15a   : > { %429 = vst [vmem:[%s1003_s13 + $0x68] sm:$0xff] %v413_v3  ;;  %430 = vst [vmem:[%s1003_s13 + $0x70] sm:$0xff] %v414_v7 }
 0x15b   : > { %431 = vst [vmem:[%s1003_s13 + $0x78] sm:$0xff] %v415_v8 }
 0x15c   : > { %691 = shalt.err (!%p688_p5)
}
 0x15d   : > { %s692_s17 = scalar_lea.hbm %s1025_s4, 2048  ;;  %s696_s11 = scalar_lea.hbm %s1097_s5, 4096 }
 0x15e   : > { %p693_p4 = scmp.ne.s32.totalorder %s1025_s4, %s692_s17  ;;  %p697_p12 = scmp.lt.u32.totalorder %s1025_s4, %s1097_s5 }
 0x15f   : > { %p698_p1 = scmp.lt.u32.totalorder %s696_s11, %s692_s17  ;;  %p700_p8 = scmp.lt.u32.totalorder %s692_s17, %s1025_s4 }
 0x160   : > { %p694_p7 = pnand %p693_p4, %p1105_p9 }
 0x161   : > { %p699_p3 = por %p698_p1, %p697_p12 }
 0x162   : > { %p695_p10 = pneg %p694_p7 }
 0x163   : > { %p701_p11 = por %p700_p8, %p699_p3 }
 0x165   : > { %p702_p0 = pnand %p701_p11, %p695_p10 }
 0x167   : > { %705 = shalt.err (!%p702_p0)
}
 0x168   : > { %s768_s13 = smov 256   ;;  %s769_s23 = smov 16  }
 0x169   : > { %573 = dma.vmem_to_hbm [thread:$0]  (%p1105_p9), %s1027_s14, 2048, %s1025_s4, %s433_s28, %s768_s13, %s768_s13, %s769_s23  }
 0x16a PF: > { %s463_s16 = sand.u32 1, %s740_s20   ;;  %p1106_p6 = scmp.ne.s32.totalorder %s1102_s9, 0 }
 0x16b   : > { %p1107_p13 = scmp.ge.s32.totalorder %s760_s25, 2  ;;  %s464_s29 = scalar_lea.sflag [#allocation5], %s463_s16 }
 0x16d   : > { %p580_p2 = pnand %p1107_p13, %p1106_p6 }
 0x16f   : > { %735 = dma.done.wait (!%p580_p2), %s464_s29, 2048  }
 0x170   : > { %737 = vsyncadd (!%p580_p2), %s464_s29, 4294965248  ;;  %s22_s25 = sadd.s32 1, %s760_s25   ;;  %s1108_s20 = smov %s744_s21 }
 0x171   : > { %p19_p5 = scmp.ge.s32.totalorder %s22_s25, 4   ;;  %s1109_s21 = smov %s748_s22 }
 0x172   : > { %s1110_s22 = smov %s859_s8  ;;  %s1111_s23 = smov %s756_s24 }
 0x173   : > { %s1112_s24 = smov %s1114_s27  ;;  %21 = sbr.rel (!%p19_p5) target bundleno = 8 (0x8), region = 85 }
 0x17a   :  { %469 = vsyncpa [#allocation4], 1 }
 0x17b   :  { %471 = vsyncpa [#allocation4 + $0x1], 1 }
 0x17c   :  { %472 = vsyncpa [#allocation5], 1 }
 0x17d   :  { %474 = vsyncpa [#allocation5 + $0x1], 1 }

</bundles_post_ra>
